<compile_context>
chip_gen: v7x
topology: tpu7x:2x2x1
jax: 0.10.0
libtpu: 0.0.40
codegen_flags: <defaults>
</compile_context>

<pallas_src>
import functools

import jax
import jax.numpy as jnp
from jax import lax
from jax.experimental import pallas as pl
from jax.experimental.pallas import tpu as pltpu

C_IN = 512          # BatchNorm2d / Linear input channels
OUT_NEURONS = 2     # gender classes
OUT_PAD = 128       # pad linear output dim to a full lane width inside the kernel
BN_EPS = 1e-5
HW_TILE_MAX = 1024  # spatial (lane) tile streamed per grid step; multiple of 128


def _gender_kernel(x_ref, w_ref, b_ref, o_ref, acc_ref, *,
                   hw_tile, hw_total, needs_mask):
    # x_ref:   (1, C, hw_tile)   input dtype (f32/bf16), native NCHW layout
    # w_ref:   (C, OUT_PAD)      f32, BN scale + 1/(H*W) folded in (VMEM-resident)
    # b_ref:   (1, OUT_PAD)      f32, BN shift folded in
    # o_ref:   (1, 1, OUT_PAD)   f32 logits (padded)
    # acc_ref: (1, C)            f32 scratch, persists across the hw grid axis
    hw_i = pl.program_id(1)

    @pl.when(hw_i == 0)
    def _():
        acc_ref[...] = jnp.zeros_like(acc_ref)

    x = x_ref[0]                                               # (C, hw_tile)
    if needs_mask:
        # Zero the ragged tail of the last spatial tile (block may extend past H*W).
        lane = hw_i * hw_tile + lax.broadcasted_iota(jnp.int32, x.shape, 1)
        x = jnp.where(lane < hw_total, x, jnp.zeros_like(x))

    # Channel-wise spatial sum on the MXU: (1, hw) contracted with (C, hw) -> (1, C).
    ones_row = jnp.ones((1, hw_tile), x.dtype)
    acc_ref[...] += lax.dot_general(
        ones_row, x,
        dimension_numbers=(((1,), (1,)), ((), ())),
        preferred_element_type=jnp.float32)

    @pl.when(hw_i == pl.num_programs(1) - 1)
    def _():
        out = jnp.dot(acc_ref[...], w_ref[...],
                      preferred_element_type=jnp.float32) + b_ref[...]  # (1, OUT_PAD)
        o_ref[0] = out.astype(o_ref.dtype)


def gender_detect_forward(x_nchw, gamma, beta, running_mean, running_var, w, b,
                          *, hw_tile_max=HW_TILE_MAX):
    """x_nchw: (B, 512, H, W). Returns (B, 2) float32 logits."""
    B, C, H, W = x_nchw.shape
    assert C == C_IN
    assert hw_tile_max % 128 == 0
    HW = H * W

    # Free view of the native layout (no transpose, no extra HBM round trip).
    x = x_nchw.reshape(B, C, HW)

    # Fold BN (inference) and the 1/(H*W) pooling factor into the linear layer.
    f32 = jnp.float32
    inv_std = lax.rsqrt(running_var.astype(f32) + f32(BN_EPS))
    scale = gamma.astype(f32) * inv_std                        # (C,)
    shift = beta.astype(f32) - running_mean.astype(f32) * scale
    w_f32 = w.astype(f32)                                      # (OUT_NEURONS, C)
    w_eff = (w_f32 * scale[None, :]).T / f32(HW)               # (C, OUT_NEURONS)
    b_eff = b.astype(f32) + shift @ w_f32.T                    # (OUT_NEURONS,)

    w_pad = jnp.zeros((C, OUT_PAD), f32).at[:, :OUT_NEURONS].set(w_eff)
    b_pad = jnp.zeros((1, OUT_PAD), f32).at[:, :OUT_NEURONS].set(b_eff)

    hw_tile = hw_tile_max if HW > hw_tile_max else HW
    num_hw = pl.cdiv(HW, hw_tile)
    needs_mask = (HW % hw_tile) != 0

    kernel = functools.partial(_gender_kernel, hw_tile=hw_tile, hw_total=HW,
                               needs_mask=needs_mask)

    dsize = jnp.dtype(x.dtype).itemsize
    cost = pl.CostEstimate(
        flops=2 * B * HW * C + 2 * B * C * OUT_PAD,
        transcendentals=0,
        bytes_accessed=B * HW * C * dsize + int(w_pad.size) * 4
        + int(b_pad.size) * 4 + B * OUT_PAD * 4)

    out_pad = pl.pallas_call(
        kernel,
        out_shape=jax.ShapeDtypeStruct((B, 1, OUT_PAD), jnp.float32),
        grid_spec=pltpu.PrefetchScalarGridSpec(
            num_scalar_prefetch=0,
            grid=(B, num_hw),
            in_specs=[
                pl.BlockSpec((1, C, hw_tile), lambda bi, hi: (bi, 0, hi)),
                pl.BlockSpec((C, OUT_PAD), lambda bi, hi: (0, 0)),
                pl.BlockSpec((1, OUT_PAD), lambda bi, hi: (0, 0)),
            ],
            out_specs=pl.BlockSpec((1, 1, OUT_PAD), lambda bi, hi: (bi, 0, 0)),
            scratch_shapes=[pltpu.VMEM((1, C_IN), jnp.float32)],
        ),
        compiler_params=pltpu.CompilerParams(
            dimension_semantics=("parallel", "arbitrary")),
        cost_estimate=cost,
    )(x, w_pad, b_pad)

    return out_pad[:, 0, :OUT_NEURONS]


def _reference(x, gamma, beta, running_mean, running_var, w, b):
    """Pure-JAX forward with the same semantics as the PyTorch module (eval mode)."""
    xn = (x - running_mean[None, :, None, None]) * lax.rsqrt(
        running_var[None, :, None, None] + BN_EPS)
    xn = xn * gamma[None, :, None, None] + beta[None, :, None, None]
    pooled = jnp.mean(xn, axis=(2, 3))                         # (B, 512)
    return pooled @ w.T + b                                    # (B, 2)


def init_params(key):
    """Deterministic synthetic parameters matching the module's shapes."""
    ks = jax.random.split(key, 6)
    gamma = 1.0 + 0.1 * jax.random.normal(ks[0], (C_IN,), jnp.float32)
    beta = 0.1 * jax.random.normal(ks[1], (C_IN,), jnp.float32)
    running_mean = 0.1 * jax.random.normal(ks[2], (C_IN,), jnp.float32)
    running_var = jax.random.uniform(ks[3], (C_IN,), jnp.float32, 0.5, 1.5)
    bound = 1.0 / jnp.sqrt(jnp.float32(C_IN))
    w = jax.random.uniform(ks[4], (OUT_NEURONS, C_IN), jnp.float32, -bound, bound)
    b = jax.random.uniform(ks[5], (OUT_NEURONS,), jnp.float32, -bound, bound)
    return gamma, beta, running_mean, running_var, w, b


if __name__ == "__main__":
    key = jax.random.PRNGKey(0)
    k_x1, k_x2, k_p = jax.random.split(key, 3)
    params = init_params(k_p)

    # Case 1: small spatial extent -> single full-extent spatial tile.
    B, H, W = 2, 16, 16
    x1 = jax.random.normal(k_x1, (B, C_IN, H, W), jnp.float32)
    out1 = jax.block_until_ready(gender_detect_forward(x1, *params))
    ref1 = _reference(x1, *params)
    assert out1.shape == (B, OUT_NEURONS)
    assert jnp.allclose(out1, ref1, atol=1e-4, rtol=1e-4)

    # Case 2: tiled spatial axis with a ragged (masked) last tile.
    B2, H2, W2 = 2, 13, 13          # HW = 169, tiled at 128 -> 2 tiles, masked tail
    x2 = jax.random.normal(k_x2, (B2, C_IN, H2, W2), jnp.float32)
    out2 = jax.block_until_ready(
        gender_detect_forward(x2, *params, hw_tile_max=128))
    ref2 = _reference(x2, *params)
    assert jnp.allclose(out2, ref2, atol=1e-4, rtol=1e-4)

    print("KERNEL_OK")
</pallas_src>

<mosaic_0001>
module attributes {stable_mosaic.version = 11 : i64} {
  func.func @_gender_kernel(%arg0: i32, %arg1: i32, %arg2: memref<1x512x256xf32, #tpu.memory_space<vmem>>, %arg3: memref<512x128xf32, #tpu.memory_space<vmem>>, %arg4: memref<1x128xf32, #tpu.memory_space<vmem>>, %arg5: memref<1x1x128xf32, #tpu.memory_space<vmem>>, %arg6: memref<1x512xf32, #tpu.memory_space<vmem>>) attributes {dimension_semantics = [#tpu.dimension_semantics<parallel>, #tpu.dimension_semantics<arbitrary>], iteration_bounds = array<i64: 2, 1>, scalar_prefetch = 0 : i64, scratch_operands = 1 : i64, tpu.core_type = #tpu.core_type<tc>, window_params = [{transform_indices = @transform_0, window_bounds = array<i64: 1, 512, 256>}, {pipeline_mode = #tpu.pipeline_mode<synchronous>, transform_indices = @transform_1, window_bounds = array<i64: 512, 128>}, {pipeline_mode = #tpu.pipeline_mode<synchronous>, transform_indices = @transform_2, window_bounds = array<i64: 1, 128>}, {transform_indices = @transform_3, window_bounds = array<i64: 1, 1, 128>}]} {
    %c0_i32 = arith.constant 0 : i32
    %0 = arith.cmpi eq, %arg1, %c0_i32 : i32
    %1 = arith.extui %0 : i1 to i32
    %c0_i32_0 = arith.constant 0 : i32
    %2 = arith.cmpi ne, %1, %c0_i32_0 : i32
    scf.if %2 {
      %cst_10 = arith.constant 0.000000e+00 : f32
      %13 = vector.broadcast %cst_10 : f32 to vector<1x512xf32>
      %c0_11 = arith.constant 0 : index
      %c0_12 = arith.constant 0 : index
      %14 = vector.load %arg6[%c0_11, %c0_12] : memref<1x512xf32, #tpu.memory_space<vmem>>, vector<1x512xf32>
      tpu.vector_store %arg6[%c0_11, %c0_12], %13 {strides = array<i32>} : memref<1x512xf32, #tpu.memory_space<vmem>>, vector<1x512xf32>,
    } else {
    }
    %c0 = arith.constant 0 : index
    %c0_1 = arith.constant 0 : index
    %c0_2 = arith.constant 0 : index
    %3 = vector.load %arg2[%c0, %c0_1, %c0_2] : memref<1x512x256xf32, #tpu.memory_space<vmem>>, vector<1x512x256xf32>
    %4 = vector.shape_cast %3 : vector<1x512x256xf32> to vector<512x256xf32>
    %cst = arith.constant 1.000000e+00 : f32
    %5 = vector.broadcast %cst : f32 to vector<1x256xf32>
    %c0_3 = arith.constant 0 : index
    %c0_4 = arith.constant 0 : index
    %6 = vector.load %arg6[%c0_3, %c0_4] : memref<1x512xf32, #tpu.memory_space<vmem>>, vector<1x512xf32>
    %cst_5 = arith.constant dense<0.000000e+00> : vector<1x512xf32>
    %7 = tpu.matmul %5, %4, %cst_5 {dimension_numbers = #tpu.dot_dimension_numbers<[1], [1], [0], [0], [0, 0, 1, 0], [], []>} : vector<1x256xf32>, vector<512x256xf32>, vector<1x512xf32> -> vector<1x512xf32>
    %8 = arith.addf %6, %7 : vector<1x512xf32>
    %c0_6 = arith.constant 0 : index
    %c0_7 = arith.constant 0 : index
    %9 = vector.load %arg6[%c0_6, %c0_7] : memref<1x512xf32, #tpu.memory_space<vmem>>, vector<1x512xf32>
    tpu.vector_store %arg6[%c0_6, %c0_7], %8 {strides = array<i32>} : memref<1x512xf32, #tpu.memory_space<vmem>>, vector<1x512xf32>,
    %c0_i32_8 = arith.constant 0 : i32
    %10 = arith.cmpi eq, %arg1, %c0_i32_8 : i32
    %11 = arith.extui %10 : i1 to i32
    %c0_i32_9 = arith.constant 0 : i32
    %12 = arith.cmpi ne, %11, %c0_i32_9 : i32
    scf.if %12 {
      %c0_10 = arith.constant 0 : index
      %c0_11 = arith.constant 0 : index
      %13 = vector.load %arg6[%c0_10, %c0_11] : memref<1x512xf32, #tpu.memory_space<vmem>>, vector<1x512xf32>
      %c0_12 = arith.constant 0 : index
      %c0_13 = arith.constant 0 : index
      %14 = vector.load %arg3[%c0_12, %c0_13] : memref<512x128xf32, #tpu.memory_space<vmem>>, vector<512x128xf32>
      %cst_14 = arith.constant dense<0.000000e+00> : vector<1x128xf32>
      %15 = tpu.matmul %13, %14, %cst_14 {dimension_numbers = #tpu.dot_dimension_numbers<[1], [0], [0], [1], [0, 0, 1, 1], [], []>} : vector<1x512xf32>, vector<512x128xf32>, vector<1x128xf32> -> vector<1x128xf32>
      %c0_15 = arith.constant 0 : index
      %c0_16 = arith.constant 0 : index
      %16 = vector.load %arg4[%c0_15, %c0_16] : memref<1x128xf32, #tpu.memory_space<vmem>>, vector<1x128xf32>
      %17 = arith.addf %15, %16 : vector<1x128xf32>
      %c0_17 = arith.constant 0 : index
      %c0_18 = arith.constant 0 : index
      %c0_19 = arith.constant 0 : index
      %18 = vector.load %arg5[%c0_17, %c0_18, %c0_19] : memref<1x1x128xf32, #tpu.memory_space<vmem>>, vector<1x1x128xf32>
      %19 = vector.shape_cast %18 : vector<1x1x128xf32> to vector<1x128xf32>
      %20 = vector.shape_cast %17 : vector<1x128xf32> to vector<1x1x128xf32>
      tpu.vector_store %arg5[%c0_17, %c0_18, %c0_19], %20 {strides = array<i32>} : memref<1x1x128xf32, #tpu.memory_space<vmem>>, vector<1x1x128xf32>,
    } else {
    }
    return
  }
  func.func @transform_0(%arg0: i32, %arg1: i32) -> (i32, i32, i32) {
    %c0_i32 = arith.constant 0 : i32
    %c0_i32_0 = arith.constant 0 : i32
    return %arg0, %c0_i32, %arg1 : i32, i32, i32
  }
  func.func @transform_1(%arg0: i32, %arg1: i32) -> (i32, i32) {
    %c0_i32 = arith.constant 0 : i32
    %c0_i32_0 = arith.constant 0 : i32
    %c0_i32_1 = arith.constant 0 : i32
    return %c0_i32, %c0_i32_0 : i32, i32
  }
  func.func @transform_2(%arg0: i32, %arg1: i32) -> (i32, i32) {
    %c0_i32 = arith.constant 0 : i32
    %c0_i32_0 = arith.constant 0 : i32
    %c0_i32_1 = arith.constant 0 : i32
    return %c0_i32, %c0_i32_0 : i32, i32
  }
  func.func @transform_3(%arg0: i32, %arg1: i32) -> (i32, i32, i32) {
    %c0_i32 = arith.constant 0 : i32
    %c0_i32_0 = arith.constant 0 : i32
    %c0_i32_1 = arith.constant 0 : i32
    return %arg0, %c0_i32, %c0_i32_0 : i32, i32, i32
  }
}

</mosaic_0001>

<bundles_post_ra>
// kernel: tpu_custom_call.1
= control target key start
LH: loop header
LB: loop body
LE: loop exit
PB: predicated region body
PF: predicated region fallthrough
CT: control target
= control target key end

     0   :  { %8 = vsyncpa [#allocation4], 0  ;;  %s1764_s0 = inlined_call_operand.hbm [shape: f32[2,512,256], index: 0, kind: input, shape index: {}]   ;;  %s1765_s1 = inlined_call_operand.hbm [shape: f32[512,128], index: 1, kind: input, shape index: {}]   ;;  %s1766_s2 = inlined_call_operand.vmem [shape: f32[1,128], index: 2, kind: input, shape index: {}]   ;;  %s1767_s3 = inlined_call_operand.hbm [shape: f32[2,1,128], index: 3, kind: output, shape index: {}]  }
   0x1   :  { %10 = vsyncpa [#allocation4 + $0x1], 0 }
   0x2   :  { %11 = vsyncpa [#allocation7], 0 }
   0x3   :  { %12 = vsyncpa [#allocation5], 0 }
   0x4   :  { %14 = vsyncpa [#allocation5 + $0x1], 0  ;;  %s1399_s12 = smov 0   ;;  %s1401_s13 = smov 0  }
   0x5   :  { %s1403_s14 = smov 0   ;;  %s1405_s15 = smov 0  }
   0x6   :  { %s1407_s16 = smov 0   ;;  %s1409_s17 = smov 0  }
   0x7 LB: > { %s866_s18 = sadd.s32 4294967295, %s1367_s17   ;;  %s867_s19 = sadd.s32 4294967294, %s1367_s17   ;;  %s1367_s17 = sphi %s1409_s17, %s20_s17   ;;  %s1363_s16 = sphi %s1407_s16, %s1793_s16   ;;  %s1359_s15 = sphi %s1405_s15, %s1792_s15   ;;  %s1355_s14 = sphi %s1403_s14, %s1791_s14   ;;  %s1351_s13 = sphi %s1401_s13, %s1790_s13   ;;  %s1347_s12 = sphi %s1399_s12, %s1789_s12  }
   0x8   : > { %p54_p0 = scmp.ne.s32.totalorder %s1351_s13, %s1347_s12  ;;  %p1433_p1 = scmp.eq.s32.totalorder %s866_s18, 0 }
   0x9   : > { %p1437_p2 = scmp.eq.s32.totalorder %s866_s18, 1  ;;  %p126_p3 = scmp.eq.s32.totalorder %s867_s19, 1 }
   0xa   : > { %s1772_s20 = scalar_select %p1433_p1, 1, 0 }
   0xb   : > { %s1773_s21 = scalar_select %p1437_p2, 1, 0 }
   0xc   : > { %p1443_p4 = por %p1433_p1, %p54_p0  ;;  %p868_p5 = scmp.ge.s32.totalorder %s1367_s17, 1 }
   0xd   : > { %p1448_p6 = por %p126_p3, %p54_p0  ;;  %p133_p7 = scmp.lt.s32.totalorder %s1367_s17, 3 }
   0xe   : > { %s1774_s22 = scalar_select %p1443_p4, 1, 0 }
   0xf   : > { %s1775_s23 = scalar_select %p1448_p6, 1, 0 }
  0x10   : > { %p1453_p8 = pnand %p868_p5, %p133_p7  ;;  %s1369_s25 = smov [#allocation6]  }
  0x11   : > { %s145_s26 = sshll.u32 %s1369_s25, 4  ;;  %s32_s28 = sadd.s32 1, %s1363_s16  ;;  %s146_s26 = int_to_ptr.vmem [resolvable:$true] %s145_s26 }
  0x12   : > { %s1776_s24 = scalar_select %p1453_p8, 1, 0 }
  0x13   : > { %p1151_p9 = pneg %p1453_p8  ;;  %s1223_s4 = scalar_lea.hbm %s1765_s1, 8192 }
  0x14   : > { %p1224_p12 = scmp.ne.s32.totalorder %s1765_s1, %s1223_s4  ;;  %p1230_p5 = scmp.lt.u32.totalorder %s1223_s4, %s1765_s1 }
  0x15   : > { %p1462_p11 = pnand %p1151_p9, %p1433_p1 }
  0x17   : > { %p1225_p13 = pneg %p1462_p11 }
  0x19   : > { %p1226_p0 = pnand %p1225_p13, %p1224_p12 }
  0x1b   : > { %p1227_p3 = pneg %p1226_p0 }
  0x1d   : > { %p1232_p7 = pnand %p1230_p5, %p1227_p3 }
  0x1f   : > { %1235 = shalt.err (!%p1232_p7)
}
  0x20   : > { %s1236_s9 = scalar_lea.vmem %s146_s26, 8192  ;;  %p1244_p1 = scmp.lt.s32.totalorder %s146_s26, %s146_s26 }
  0x21   : > { %p1237_p9 = scmp.ne.s32.totalorder %s146_s26, %s1236_s9  ;;  %p1245_p4 = scmp.lt.s32.totalorder %s1236_s9, %s1236_s9 }
  0x23   : > { %p1239_p10 = pnand %p1237_p9, %p1225_p13  ;;  %p1246_p8 = por %p1245_p4, %p1244_p1 }
  0x25   : > { %p1240_p6 = pneg %p1239_p10 }
  0x27   : > { %p1247_p2 = pnand %p1246_p8, %p1240_p6 }
  0x29   : > { %1250 = shalt.err (!%p1247_p2)
}
  0x2a   : > { %s1370_s10 = smov 128   ;;  %s1371_s11 = smov 8  }
  0x2b   : > { %1154 = dma.hbm_to_vmem [thread:$0]  (!%p1462_p11), %s1765_s1, 8192, %s146_s26, [#allocation7], %s1370_s10, %s1370_s10, %s1371_s11  }
  0x2c   : > { %p34_p1 = scmp.ge.s32.totalorder %s32_s28, 2  ;;  %s41_s25 = sadd.s32 1, %s1355_s14 }
  0x2d   : > { %p48_p2 = scmp.ne.s32.totalorder %s1355_s14, %s1351_s13  ;;  %p49_p4 = scmp.eq.s32.totalorder %s1367_s17, 0 }
  0x2e   : > { %s1795_s28 = smov (%p34_p1, %s32_s28), 0  ;;  %p1779_p8 = scmp.ne.s32.totalorder %s1773_s21, 0 }
  0x2f   : > { %p1489_p6 = por %p49_p4, %p48_p2  ;;  %s36_s27 = ssub.s32 %s1363_s16, %s1795_s28 }
  0x30   : > { %p1495_p10 = por %p1779_p8, %p48_p2  ;;  %p1164_p12 = scmp.lt.s32.totalorder %s1367_s17, 2 }
  0x31   : > { %p39_p11 = scmp.eq.s32.totalorder %s36_s27, 0  ;;  %s162_s26 = sand.u32 1, %s1355_s14  }
  0x32   : > { %s871_s4 = sshll.u32 %s162_s26, 10  ;;  %s880_s6 = sshll.u32 %s1363_s16, 14 }
  0x33   : > { %s1504_s5 = scalar_select %p39_p11, %s1355_s14, %s41_s25  }
  0x34   : > { %s1510_s9 = scalar_lea.hbm %s1764_s0, %s880_s6  ;;  %s166_s21 = scalar_lea.vmem [#allocation3], %s871_s4 }
  0x35   : > { %s175_s10 = sshll.u32 %s166_s21, 4  ;;  %p1516_p13 = pnand %p1164_p12, %p1489_p6  ;;  %s1512_s10 = int_to_ptr.vmem [resolvable:$true] %s175_s10 }
  0x36   : > { %s1520_s18 = scalar_lea.sflag [#allocation4], %s162_s26  ;;  %s1251_s19 = scalar_lea.hbm %s1510_s9, 16384 }
  0x37   : > { %p1252_p0 = scmp.ne.s32.totalorder %s1510_s9, %s1251_s19  ;;  %p1253_p3 = pneg %p1516_p13 }
  0x38   : > { %s1256_s29 = scalar_lea.hbm %s1764_s0, 32768  ;;  %p1257_p9 = scmp.lt.u32.totalorder %s1510_s9, %s1764_s0 }
  0x39   : > { %p1254_p5 = pnand %p1253_p3, %p1252_p0  ;;  %p1258_p1 = scmp.lt.u32.totalorder %s1256_s29, %s1251_s19 }
  0x3a   : > { %p1260_p4 = scmp.lt.u32.totalorder %s1251_s19, %s1510_s9 }
  0x3b   : > { %p1255_p7 = pneg %p1254_p5  ;;  %p1259_p2 = por %p1258_p1, %p1257_p9 }
  0x3d   : > { %p1261_p6 = por %p1260_p4, %p1259_p2 }
  0x3f   : > { %p1262_p8 = pnand %p1261_p6, %p1255_p7 }
  0x41   : > { %1265 = shalt.err (!%p1262_p8)
}
  0x42   : > { %s1266_s26 = scalar_lea.vmem %s1512_s10, 16384  ;;  %s1372_s7 = smov [#allocation3]  }
  0x43   : > { %p1267_p12 = scmp.ne.s32.totalorder %s1512_s10, %s1266_s26  ;;  %s1271_s8 = sshll.u32 %s1372_s7, 4  ;;  %s1272_s8 = int_to_ptr.vmem [resolvable:$false] %s1271_s8 }
  0x44   : > { %s1273_s21 = scalar_lea.vmem %s1272_s8, 32768  ;;  %p1274_p5 = scmp.lt.s32.totalorder %s1512_s10, %s1272_s8 }
  0x45   : > { %p1269_p11 = pnand %p1267_p12, %p1253_p3  ;;  %p1275_p9 = scmp.lt.s32.totalorder %s1273_s21, %s1266_s26 }
  0x47   : > { %p1270_p0 = pneg %p1269_p11  ;;  %p1276_p1 = por %p1275_p9, %p1274_p5 }
  0x49   : > { %p1277_p2 = pnand %p1276_p1, %p1270_p0 }
  0x4b   : > { %1280 = shalt.err (!%p1277_p2)
}
  0x4c   : > { %s1373_s19 = smov 256   ;;  %s1374_s25 = smov 16  }
  0x4d   : > { %1158 = dma.hbm_to_vmem [thread:$0]  (!%p1516_p13), %s1510_s9, 16384, %s1512_s10, %s1520_s18, %s1373_s19, %s1373_s19, %s1374_s25  }
  0x4e   : > { %p1782_p3 = scmp.ne.s32.totalorder %s1776_s24, 0 }
  0x4f   : > { %s1551_s27 = sand.u32 (!%p1782_p3), 1, %s1351_s13   ;;  %p1783_p7 = scmp.ne.s32.totalorder (!%p1782_p3), %s1774_s22, 0 }
  0x50   : > { %187 = sbr.rel (%p1782_p3) target bundleno = 691 (0x2b3), region = 32  ;;  %s875_s29 = sshll.u32 (!%p1782_p3), %s1551_s27, 10 }
  0x51   : > { %s190_s4 = scalar_lea.sflag (!%p1782_p3), [#allocation4], %s1551_s27  ;;  %s1555_s6 = scalar_lea.vmem (!%p1782_p3), [#allocation3], %s875_s29 }
  0x57   : > { %1334 = dma.done.wait (%p1783_p7), %s190_s4, 16384  }
  0x58   : > { %1336 = vsyncadd (%p1783_p7), %s190_s4, 4294950912  ;;  %p1784_p13 = scmp.ne.s32.totalorder %s1772_s20, 0 }
  0x5a   : > { %1338 = dma.done.wait (%p1784_p13), [#allocation7], 8192  }
  0x5b   : > { %1340 = vsyncadd (%p1784_p13), [#allocation7], 4294959104  ;;  %v1375_v0 = vmov 1.0   ;;  %v230_v1 = vld [vmem:[%s1555_s6 + $0x8] sm:$0xff]  ;;  %v232_v2 = vld [vmem:[%s1555_s6 + $0x18] sm:$0xff]  ;;  %s877_s24 = sshll.u32 %s1359_s15, 4 }
  0x5c   : > { %422 = vmatprep.mubr.f32.mxu0 %v1375_v0  ;;  %493 = vmatprep.mubr.f32.mxu1 %v1375_v0  ;;  %v294_v3 = vld [vmem:[%s1555_s6 + $0x208] sm:$0xff]  ;;  %v951_v4 = vpack.c.bf16 %v232_v2, %v230_v1  ;;  %v296_v5 = vld [vmem:[%s1555_s6 + $0x218] sm:$0xff]  ;;  %v229_v6 = vld [vmem:[%s1555_s6] sm:$0xff]  ;;  %s218_s9 = scalar_lea.vmem [#allocation8], %s1551_s27  ;;  %s1715_s26 = scalar_lea.hbm %s1767_s3, %s877_s24 }
  0x5d   : > { %v231_v7 = vld [vmem:[%s1555_s6 + $0x10] sm:$0xff]  ;;  %v1015_v8 = vpack.c.bf16 %v296_v5, %v294_v3  ;;  %v293_v10 = vld [vmem:[%s1555_s6 + $0x200] sm:$0xff]  ;;  %v234_v12 = vld [vmem:[%s1555_s6 + $0x28] sm:$0xff]  ;;  %s779_s10 = sshll.u32 %s218_s9, 4  ;;  %s767_s7 = scalar_lea.sflag [#allocation5], %s1551_s27  ;;  %s1717_s10 = int_to_ptr.vmem [resolvable:$true] %s779_s10 }
  0x5e   : > { %v953_v9 = vpack.c.bf16 %v231_v7, %v229_v6  ;;  %v295_v11 = vld [vmem:[%s1555_s6 + $0x210] sm:$0xff]  ;;  %952 = vmatprep.subr.bf16.mxu0 %v951_v4  ;;  %v236_v14 = vld [vmem:[%s1555_s6 + $0x38] sm:$0xff]  ;;  %v298_v15 = vld [vmem:[%s1555_s6 + $0x228] sm:$0xff]  ;;  %s1281_s8 = scalar_lea.vmem %s1717_s10, 16  ;;  %s1378_s15 = smov [#allocation8]  }
  0x5f   : > { %v1017_v13 = vpack.c.bf16 %v295_v11, %v293_v10  ;;  %v300_v16 = vld [vmem:[%s1555_s6 + $0x238] sm:$0xff]  ;;  %1016 = vmatprep.subr.bf16.mxu1 %v1015_v8  ;;  %v955_v17 = vpack.c.bf16 %v236_v14, %v234_v12  ;;  %v233_v19 = vld [vmem:[%s1555_s6 + $0x20] sm:$0xff]  ;;  %v235_v20 = vld [vmem:[%s1555_s6 + $0x30] sm:$0xff]  ;;  %p1282_p4 = scmp.ne.s32.totalorder %s1717_s10, %s1281_s8  ;;  %s1285_s21 = sshll.u32 %s1378_s15, 4  ;;  %s1286_s21 = int_to_ptr.vmem [resolvable:$false] %s1285_s21 }
  0x60   : > { %954 = vmatpush1.bf16.xpose.msra.mxu0 %v953_v9  ;;  %v1019_v18 = vpack.c.bf16 %v300_v16, %v298_v15  ;;  %v297_v21 = vld [vmem:[%s1555_s6 + $0x220] sm:$0xff]  ;;  %v299_v22 = vld [vmem:[%s1555_s6 + $0x230] sm:$0xff]  ;;  %v238_v23 = vld [vmem:[%s1555_s6 + $0x48] sm:$0xff]  ;;  %v957_v27 = vpack.c.bf16 %v235_v20, %v233_v19  ;;  %s1287_s19 = scalar_lea.vmem %s1286_s21, 32  ;;  %p1288_p12 = scmp.lt.s32.totalorder %s1717_s10, %s1286_s21 }
  0x61   : > { %1018 = vmatpush1.bf16.xpose.msra.mxu1 %v1017_v13  ;;  %956 = vmatprep.subr.bf16.mxu0 %v955_v17  ;;  %v240_v24 = vld [vmem:[%s1555_s6 + $0x58] sm:$0xff]  ;;  %v302_v25 = vld [vmem:[%s1555_s6 + $0x248] sm:$0xff]  ;;  %v1021_v28 = vpack.c.bf16 %v299_v22, %v297_v21  ;;  %v237_v31 = vld [vmem:[%s1555_s6 + $0x40] sm:$0xff]  ;;  %p1283_p6 = pnand %p1282_p4, %p1495_p10  ;;  %p1289_p11 = scmp.lt.s32.totalorder %s1287_s19, %s1281_s8 }
  0x62   : > { %1020 = vmatprep.subr.bf16.mxu1 %v1019_v18  ;;  %v304_v26 = vld [vmem:[%s1555_s6 + $0x258] sm:$0xff]  ;;  %v959_v29 = vpack.c.bf16 %v240_v24, %v238_v23  ;;  %v239_v32 = vld [vmem:[%s1555_s6 + $0x50] sm:$0xff]  ;;  %v301_v33 = vld [vmem:[%s1555_s6 + $0x240] sm:$0xff] }
  0x63   : > { %v1023_v30 = vpack.c.bf16 %v304_v26, %v302_v25  ;;  %v303_v34 = vld [vmem:[%s1555_s6 + $0x250] sm:$0xff]  ;;  %v242_v35 = vld [vmem:[%s1555_s6 + $0x68] sm:$0xff]  ;;  %v244_v36 = vld [vmem:[%s1555_s6 + $0x78] sm:$0xff]  ;;  %v961_v39 = vpack.c.bf16 %v239_v32, %v237_v31  ;;  %p1284_p8 = pneg %p1283_p6  ;;  %p1290_p0 = por %p1289_p11, %p1288_p12 }
  0x64   : > { %v306_v37 = vld [vmem:[%s1555_s6 + $0x268] sm:$0xff]  ;;  %v308_v38 = vld [vmem:[%s1555_s6 + $0x278] sm:$0xff]  ;;  %v1025_v40 = vpack.c.bf16 %v303_v34, %v301_v33  ;;  %v963_v41 = vpack.c.bf16 %v244_v36, %v242_v35  ;;  %v241_v43 = vld [vmem:[%s1555_s6 + $0x60] sm:$0xff] }
  0x65   : > { %v1027_v42 = vpack.c.bf16 %v308_v38, %v306_v37  ;;  %v243_v44 = vld [vmem:[%s1555_s6 + $0x70] sm:$0xff]  ;;  %v305_v45 = vld [vmem:[%s1555_s6 + $0x260] sm:$0xff]  ;;  %v246_v47 = vld [vmem:[%s1555_s6 + $0x88] sm:$0xff]  ;;  %p1291_p5 = pnand %p1290_p0, %p1284_p8 }
  0x66   : > { %v307_v46 = vld [vmem:[%s1555_s6 + $0x270] sm:$0xff]  ;;  %v248_v48 = vld [vmem:[%s1555_s6 + $0x98] sm:$0xff]  ;;  %v310_v49 = vld [vmem:[%s1555_s6 + $0x288] sm:$0xff]  ;;  %v965_v51 = vpack.c.bf16 %v243_v44, %v241_v43 }
  0x67   : > { %v312_v50 = vld [vmem:[%s1555_s6 + $0x298] sm:$0xff]  ;;  %v1029_v52 = vpack.c.bf16 %v307_v46, %v305_v45  ;;  %v967_v53 = vpack.c.bf16 %v248_v48, %v246_v47  ;;  %v245_v55 = vld [vmem:[%s1555_s6 + $0x80] sm:$0xff]  ;;  %v247_v56 = vld [vmem:[%s1555_s6 + $0x90] sm:$0xff] }
  0x68   : > { %958 = vmatpush1.bf16.xpose.msra.mxu0 %v957_v27  ;;  %v1031_v54 = vpack.c.bf16 %v312_v50, %v310_v49  ;;  %v309_v57 = vld [vmem:[%s1555_s6 + $0x280] sm:$0xff]  ;;  %v311_v58 = vld [vmem:[%s1555_s6 + $0x290] sm:$0xff]  ;;  %v250_v59 = vld [vmem:[%s1555_s6 + $0xa8] sm:$0xff]  ;;  %v969_v63 = vpack.c.bf16 %v247_v56, %v245_v55 }
  0x69   : > { %1022 = vmatpush1.bf16.xpose.msra.mxu1 %v1021_v28  ;;  %960 = vmatprep.subr.bf16.mxu0 %v959_v29  ;;  %v252_v60 = vld [vmem:[%s1555_s6 + $0xb8] sm:$0xff]  ;;  %v314_v61 = vld [vmem:[%s1555_s6 + $0x2a8] sm:$0xff]  ;;  %v1033_v1 = vpack.c.bf16 %v311_v58, %v309_v57  ;;  %v249_v4 = vld [vmem:[%s1555_s6 + $0xa0] sm:$0xff] }
  0x6a   : > { %1024 = vmatprep.subr.bf16.mxu1 %v1023_v30  ;;  %v316_v62 = vld [vmem:[%s1555_s6 + $0x2b8] sm:$0xff]  ;;  %v971_v2 = vpack.c.bf16 %v252_v60, %v250_v59  ;;  %v251_v5 = vld [vmem:[%s1555_s6 + $0xb0] sm:$0xff]  ;;  %v313_v6 = vld [vmem:[%s1555_s6 + $0x2a0] sm:$0xff] }
  0x6b   : > { %v1035_v3 = vpack.c.bf16 %v316_v62, %v314_v61  ;;  %v315_v7 = vld [vmem:[%s1555_s6 + $0x2b0] sm:$0xff]  ;;  %v254_v8 = vld [vmem:[%s1555_s6 + $0xc8] sm:$0xff]  ;;  %v256_v9 = vld [vmem:[%s1555_s6 + $0xd8] sm:$0xff]  ;;  %v973_v12 = vpack.c.bf16 %v251_v5, %v249_v4 }
  0x6c   : > { %v318_v10 = vld [vmem:[%s1555_s6 + $0x2c8] sm:$0xff]  ;;  %v320_v11 = vld [vmem:[%s1555_s6 + $0x2d8] sm:$0xff]  ;;  %v1037_v13 = vpack.c.bf16 %v315_v7, %v313_v6  ;;  %v975_v14 = vpack.c.bf16 %v256_v9, %v254_v8  ;;  %v253_v16 = vld [vmem:[%s1555_s6 + $0xc0] sm:$0xff] }
  0x6d   : > { %v1039_v15 = vpack.c.bf16 %v320_v11, %v318_v10  ;;  %v255_v17 = vld [vmem:[%s1555_s6 + $0xd0] sm:$0xff]  ;;  %v317_v18 = vld [vmem:[%s1555_s6 + $0x2c0] sm:$0xff]  ;;  %v258_v20 = vld [vmem:[%s1555_s6 + $0xe8] sm:$0xff] }
  0x6e   : > { %v319_v19 = vld [vmem:[%s1555_s6 + $0x2d0] sm:$0xff]  ;;  %v260_v21 = vld [vmem:[%s1555_s6 + $0xf8] sm:$0xff]  ;;  %v322_v22 = vld [vmem:[%s1555_s6 + $0x2e8] sm:$0xff]  ;;  %v977_v24 = vpack.c.bf16 %v255_v17, %v253_v16 }
  0x6f   : > { %v324_v23 = vld [vmem:[%s1555_s6 + $0x2f8] sm:$0xff]  ;;  %v1041_v25 = vpack.c.bf16 %v319_v19, %v317_v18  ;;  %v979_v26 = vpack.c.bf16 %v260_v21, %v258_v20  ;;  %v257_v28 = vld [vmem:[%s1555_s6 + $0xe0] sm:$0xff]  ;;  %v259_v29 = vld [vmem:[%s1555_s6 + $0xf0] sm:$0xff] }
  0x70   : > { %962 = vmatpush1.bf16.xpose.msra.mxu0 %v961_v39  ;;  %v1043_v27 = vpack.c.bf16 %v324_v23, %v322_v22  ;;  %v321_v30 = vld [vmem:[%s1555_s6 + $0x2e0] sm:$0xff]  ;;  %v323_v31 = vld [vmem:[%s1555_s6 + $0x2f0] sm:$0xff]  ;;  %v262_v32 = vld [vmem:[%s1555_s6 + $0x108] sm:$0xff]  ;;  %v981_v36 = vpack.c.bf16 %v259_v29, %v257_v28 }
  0x71   : > { %1026 = vmatpush1.bf16.xpose.msra.mxu1 %v1025_v40  ;;  %964 = vmatprep.subr.bf16.mxu0 %v963_v41  ;;  %v264_v33 = vld [vmem:[%s1555_s6 + $0x118] sm:$0xff]  ;;  %v326_v34 = vld [vmem:[%s1555_s6 + $0x308] sm:$0xff]  ;;  %v1045_v37 = vpack.c.bf16 %v323_v31, %v321_v30  ;;  %v261_v40 = vld [vmem:[%s1555_s6 + $0x100] sm:$0xff] }
  0x72   : > { %1028 = vmatprep.subr.bf16.mxu1 %v1027_v42  ;;  %v328_v35 = vld [vmem:[%s1555_s6 + $0x318] sm:$0xff]  ;;  %v983_v38 = vpack.c.bf16 %v264_v33, %v262_v32  ;;  %v263_v41 = vld [vmem:[%s1555_s6 + $0x110] sm:$0xff]  ;;  %v325_v42 = vld [vmem:[%s1555_s6 + $0x300] sm:$0xff] }
  0x73   : > { %v1047_v39 = vpack.c.bf16 %v328_v35, %v326_v34  ;;  %v327_v43 = vld [vmem:[%s1555_s6 + $0x310] sm:$0xff]  ;;  %v266_v44 = vld [vmem:[%s1555_s6 + $0x128] sm:$0xff]  ;;  %v268_v45 = vld [vmem:[%s1555_s6 + $0x138] sm:$0xff]  ;;  %v985_v48 = vpack.c.bf16 %v263_v41, %v261_v40 }
  0x74   : > { %v330_v46 = vld [vmem:[%s1555_s6 + $0x328] sm:$0xff]  ;;  %v332_v47 = vld [vmem:[%s1555_s6 + $0x338] sm:$0xff]  ;;  %v1049_v49 = vpack.c.bf16 %v327_v43, %v325_v42  ;;  %v987_v50 = vpack.c.bf16 %v268_v45, %v266_v44  ;;  %v331_v55 = vld [vmem:[%s1555_s6 + $0x330] sm:$0xff] }
  0x75   : > { %v270_v56 = vld [vmem:[%s1555_s6 + $0x148] sm:$0xff]  ;;  %v272_v57 = vld [vmem:[%s1555_s6 + $0x158] sm:$0xff]  ;;  %v335_v4 = vld [vmem:[%s1555_s6 + $0x350] sm:$0xff] }
  0x76   : > { %v334_v58 = vld [vmem:[%s1555_s6 + $0x348] sm:$0xff]  ;;  %v336_v59 = vld [vmem:[%s1555_s6 + $0x358] sm:$0xff]  ;;  %v991_v62 = vpack.c.bf16 %v272_v57, %v270_v56  ;;  %v339_v16 = vld [vmem:[%s1555_s6 + $0x370] sm:$0xff] }
  0x77   : > { %v274_v5 = vld [vmem:[%s1555_s6 + $0x168] sm:$0xff]  ;;  %v276_v6 = vld [vmem:[%s1555_s6 + $0x178] sm:$0xff]  ;;  %v343_v28 = vld [vmem:[%s1555_s6 + $0x390] sm:$0xff] }
  0x78   : > { %966 = vmatpush1.bf16.xpose.msra.mxu0 %v965_v51  ;;  %v1051_v51 = vpack.c.bf16 %v332_v47, %v330_v46  ;;  %v338_v7 = vld [vmem:[%s1555_s6 + $0x368] sm:$0xff]  ;;  %v340_v8 = vld [vmem:[%s1555_s6 + $0x378] sm:$0xff]  ;;  %v995_v11 = vpack.c.bf16 %v276_v6, %v274_v5  ;;  %v347_v40 = vld [vmem:[%s1555_s6 + $0x3b0] sm:$0xff] }
  0x79   : > { %1030 = vmatpush1.bf16.xpose.msra.mxu1 %v1029_v52  ;;  %968 = vmatprep.subr.bf16.mxu0 %v967_v53  ;;  %v265_v52 = vld [vmem:[%s1555_s6 + $0x120] sm:$0xff]  ;;  %v267_v53 = vld [vmem:[%s1555_s6 + $0x130] sm:$0xff]  ;;  %v278_v17 = vld [vmem:[%s1555_s6 + $0x188] sm:$0xff] }
  0x7a   : > { %1032 = vmatprep.subr.bf16.mxu1 %v1031_v54  ;;  %v329_v54 = vld [vmem:[%s1555_s6 + $0x320] sm:$0xff]  ;;  %v989_v60 = vpack.c.bf16 %v267_v53, %v265_v52  ;;  %v280_v18 = vld [vmem:[%s1555_s6 + $0x198] sm:$0xff]  ;;  %v342_v19 = vld [vmem:[%s1555_s6 + $0x388] sm:$0xff] }
  0x7b   : > { %v1053_v61 = vpack.c.bf16 %v331_v55, %v329_v54  ;;  %v344_v20 = vld [vmem:[%s1555_s6 + $0x398] sm:$0xff]  ;;  %v999_v23 = vpack.c.bf16 %v280_v18, %v278_v17  ;;  %v282_v29 = vld [vmem:[%s1555_s6 + $0x1a8] sm:$0xff]  ;;  %v351_v52 = vld [vmem:[%s1555_s6 + $0x3d0] sm:$0xff] }
  0x7c   : > { %v284_v30 = vld [vmem:[%s1555_s6 + $0x1b8] sm:$0xff]  ;;  %v346_v31 = vld [vmem:[%s1555_s6 + $0x3a8] sm:$0xff] }
  0x7d   : > { %v348_v32 = vld [vmem:[%s1555_s6 + $0x3b8] sm:$0xff]  ;;  %v1003_v35 = vpack.c.bf16 %v284_v30, %v282_v29  ;;  %v286_v41 = vld [vmem:[%s1555_s6 + $0x1c8] sm:$0xff] }
  0x7e   : > { %v288_v42 = vld [vmem:[%s1555_s6 + $0x1d8] sm:$0xff]  ;;  %v350_v43 = vld [vmem:[%s1555_s6 + $0x3c8] sm:$0xff] }
  0x7f   : > { %v352_v44 = vld [vmem:[%s1555_s6 + $0x3d8] sm:$0xff]  ;;  %v1007_v47 = vpack.c.bf16 %v288_v42, %v286_v41  ;;  %v290_v53 = vld [vmem:[%s1555_s6 + $0x1e8] sm:$0xff]  ;;  %v593_v42 = vld [vmem:[#allocation6 + $0x1b0] sm:$0xff] }
  0x80   : > { %970 = vmatpush1.bf16.xpose.msra.mxu0 %v969_v63  ;;  %v1055_v63 = vpack.c.bf16 %v336_v59, %v334_v58  ;;  %v292_v54 = vld [vmem:[%s1555_s6 + $0x1f8] sm:$0xff]  ;;  %v354_v55 = vld [vmem:[%s1555_s6 + $0x3e8] sm:$0xff] }
  0x81   : > { %1034 = vmatpush1.bf16.xpose.msra.mxu1 %v1033_v1  ;;  %972 = vmatprep.subr.bf16.mxu0 %v971_v2  ;;  %v269_v1 = vld [vmem:[%s1555_s6 + $0x140] sm:$0xff]  ;;  %v271_v2 = vld [vmem:[%s1555_s6 + $0x150] sm:$0xff]  ;;  %v356_v56 = vld [vmem:[%s1555_s6 + $0x3f8] sm:$0xff]  ;;  %v1011_v59 = vpack.c.bf16 %v292_v54, %v290_v53 }
  0x82   : > { %1036 = vmatprep.subr.bf16.mxu1 %v1035_v3  ;;  %v333_v3 = vld [vmem:[%s1555_s6 + $0x340] sm:$0xff]  ;;  %v993_v9 = vpack.c.bf16 %v271_v2, %v269_v1  ;;  %v355_v1 = vld [vmem:[%s1555_s6 + $0x3f0] sm:$0xff]  ;;  %v588_v5 = vld [vmem:[#allocation6 + $0x188] sm:$0xff] }
  0x83   : > { %v1057_v10 = vpack.c.bf16 %v335_v4, %v333_v3  ;;  %v555_v2 = vld [vmem:[#allocation6 + $0x80] sm:$0xff]  ;;  %v556_v3 = vld [vmem:[#allocation6 + $0x88] sm:$0xff]  ;;  %v590_v17 = vld [vmem:[#allocation6 + $0x198] sm:$0xff] }
  0x84   : > { %v587_v4 = vld [vmem:[#allocation6 + $0x180] sm:$0xff]  ;;  %v592_v29 = vld [vmem:[#allocation6 + $0x1a8] sm:$0xff]  ;;  %v562_v41 = vld [vmem:[#allocation6 + $0xb8] sm:$0xff] }
  0x85   : > { %v563_v54 = vld [vmem:[#allocation6 + $0xc0] sm:$0xff] }
  0x88   : > { %974 = vmatpush1.bf16.xpose.msra.mxu0 %v973_v12  ;;  %v1059_v12 = vpack.c.bf16 %v340_v8, %v338_v7  ;;  %v1079_v8 = vpack.c.bf16 %v556_v3, %v555_v2  ;;  %v565_v3 = vld [vmem:[#allocation6 + $0xd0] sm:$0xff] }
  0x89   : > { %1038 = vmatpush1.bf16.xpose.msra.mxu1 %v1037_v13  ;;  %976 = vmatprep.subr.bf16.mxu0 %v975_v14  ;;  %v273_v13 = vld [vmem:[%s1555_s6 + $0x160] sm:$0xff]  ;;  %v275_v14 = vld [vmem:[%s1555_s6 + $0x170] sm:$0xff] }
  0x8a   : > { %1040 = vmatprep.subr.bf16.mxu1 %v1039_v15  ;;  %v337_v15 = vld [vmem:[%s1555_s6 + $0x360] sm:$0xff]  ;;  %v997_v21 = vpack.c.bf16 %v275_v14, %v273_v13  ;;  %v572_v13 = vld [vmem:[#allocation6 + $0x108] sm:$0xff]  ;;  %v557_v14 = vld [vmem:[#allocation6 + $0x90] sm:$0xff] }
  0x8b   : > { %v1061_v22 = vpack.c.bf16 %v339_v16, %v337_v15  ;;  %v558_v15 = vld [vmem:[#allocation6 + $0x98] sm:$0xff]  ;;  %v589_v16 = vld [vmem:[#allocation6 + $0x190] sm:$0xff] }
  0x90   : > { %978 = vmatpush1.bf16.xpose.msra.mxu0 %v977_v24  ;;  %v1063_v24 = vpack.c.bf16 %v344_v20, %v342_v19  ;;  %v1083_v20 = vpack.c.bf16 %v558_v15, %v557_v14  ;;  %v567_v15 = vld [vmem:[#allocation6 + $0xe0] sm:$0xff] }
  0x91   : > { %1042 = vmatpush1.bf16.xpose.msra.mxu1 %v1041_v25  ;;  %980 = vmatprep.subr.bf16.mxu0 %v979_v26  ;;  %v277_v25 = vld [vmem:[%s1555_s6 + $0x180] sm:$0xff]  ;;  %v279_v26 = vld [vmem:[%s1555_s6 + $0x190] sm:$0xff] }
  0x92   : > { %1044 = vmatprep.subr.bf16.mxu1 %v1043_v27  ;;  %v341_v27 = vld [vmem:[%s1555_s6 + $0x380] sm:$0xff]  ;;  %v1001_v33 = vpack.c.bf16 %v279_v26, %v277_v25  ;;  %v574_v25 = vld [vmem:[#allocation6 + $0x118] sm:$0xff] }
  0x93   : > { %v1065_v34 = vpack.c.bf16 %v343_v28, %v341_v27  ;;  %v559_v26 = vld [vmem:[#allocation6 + $0xa0] sm:$0xff]  ;;  %v560_v27 = vld [vmem:[#allocation6 + $0xa8] sm:$0xff] }
  0x94   : > { %v591_v28 = vld [vmem:[#allocation6 + $0x1a0] sm:$0xff] }
  0x98   : > { %982 = vmatpush1.bf16.xpose.msra.mxu0 %v981_v36  ;;  %v1067_v36 = vpack.c.bf16 %v348_v32, %v346_v31  ;;  %v1087_v32 = vpack.c.bf16 %v560_v27, %v559_v26  ;;  %v569_v26 = vld [vmem:[#allocation6 + $0xf0] sm:$0xff] }
  0x99   : > { %1046 = vmatpush1.bf16.xpose.msra.mxu1 %v1045_v37  ;;  %984 = vmatprep.subr.bf16.mxu0 %v983_v38  ;;  %v281_v37 = vld [vmem:[%s1555_s6 + $0x1a0] sm:$0xff]  ;;  %v283_v38 = vld [vmem:[%s1555_s6 + $0x1b0] sm:$0xff] }
  0x9a   : > { %1048 = vmatprep.subr.bf16.mxu1 %v1047_v39  ;;  %v345_v39 = vld [vmem:[%s1555_s6 + $0x3a0] sm:$0xff]  ;;  %v1005_v45 = vpack.c.bf16 %v283_v38, %v281_v37  ;;  %v576_v38 = vld [vmem:[#allocation6 + $0x128] sm:$0xff] }
  0x9b   : > { %v1069_v46 = vpack.c.bf16 %v347_v40, %v345_v39  ;;  %v224_v39 = vlaneseq }
  0x9d   : > { %vm1698_vm0 = vcmp.lt.s32.totalorder %v224_v39, 512 }
  0xa0   : > { %986 = vmatpush1.bf16.xpose.msra.mxu0 %v985_v48  ;;  %v1071_v48 = vpack.c.bf16 %v352_v44, %v350_v43  ;;  %v603_v43 = vld [vmem:[%s1766_s2] sm:$0x1] }
  0xa1   : > { %1050 = vmatpush1.bf16.xpose.msra.mxu1 %v1049_v49  ;;  %988 = vmatprep.subr.bf16.mxu0 %v987_v50  ;;  %v285_v49 = vld [vmem:[%s1555_s6 + $0x1c0] sm:$0xff]  ;;  %v287_v50 = vld [vmem:[%s1555_s6 + $0x1d0] sm:$0xff] }
  0xa2   : > { %1052 = vmatprep.subr.bf16.mxu1 %v1051_v51  ;;  %v349_v51 = vld [vmem:[%s1555_s6 + $0x3c0] sm:$0xff]  ;;  %v1009_v57 = vpack.c.bf16 %v287_v50, %v285_v49 }
  0xa3   : > { %v1073_v58 = vpack.c.bf16 %v351_v52, %v349_v51  ;;  %v577_v51 = vld [vmem:[#allocation6 + $0x130] sm:$0xff]  ;;  %v578_v52 = vld [vmem:[#allocation6 + $0x138] sm:$0xff] }
  0xa4   : > { %v1125_v53 = vpack.c.bf16 %v578_v52, %v577_v51 }
  0xa8   : > { %990 = vmatpush1.bf16.xpose.msra.mxu0 %v989_v60  ;;  %v1075_v60 = vpack.c.bf16 %v356_v56, %v354_v55  ;;  %v564_v55 = vld [vmem:[#allocation6 + $0xc8] sm:$0xff]  ;;  %v595_v56 = vld [vmem:[#allocation6 + $0x1c0] sm:$0xff] }
  0xa9   : > { %1054 = vmatpush1.bf16.xpose.msra.mxu1 %v1053_v61  ;;  %992 = vmatprep.subr.bf16.mxu0 %v991_v62  ;;  %v289_v61 = vld [vmem:[%s1555_s6 + $0x1e0] sm:$0xff]  ;;  %v291_v62 = vld [vmem:[%s1555_s6 + $0x1f0] sm:$0xff] }
  0xaa   : > { %1056 = vmatprep.subr.bf16.mxu1 %v1055_v63  ;;  %v353_v63 = vld [vmem:[%s1555_s6 + $0x3e0] sm:$0xff]  ;;  %v1013_v6 = vpack.c.bf16 %v291_v62, %v289_v61 }
  0xab   : > { %v1077_v7 = vpack.c.bf16 %v355_v1, %v353_v63  ;;  %v579_v63 = vld [vmem:[#allocation6 + $0x140] sm:$0xff]  ;;  %v580_v1 = vld [vmem:[#allocation6 + $0x148] sm:$0xff] }
  0xac   : > { %v1129_v2 = vpack.c.bf16 %v580_v1, %v579_v63 }
  0xb0   : > { %994 = vmatpush1.bf16.xpose.msra.mxu0 %v993_v9  ;;  %v1111_v9 = vpack.c.bf16 %v588_v5, %v587_v4  ;;  %v566_v4 = vld [vmem:[#allocation6 + $0xd8] sm:$0xff]  ;;  %v597_v5 = vld [vmem:[#allocation6 + $0x1d0] sm:$0xff] }
  0xb1   : > { %1058 = vmatpush1.bf16.xpose.msra.mxu1 %v1057_v10  ;;  %996 = vmatprep.subr.bf16.mxu0 %v995_v11  ;;  %v539_v10 = vld [vmem:[#allocation6] sm:$0xff]  ;;  %v540_v11 = vld [vmem:[#allocation6 + $0x8] sm:$0xff] }
  0xb2   : > { %1060 = vmatprep.subr.bf16.mxu1 %v1059_v12  ;;  %v571_v12 = vld [vmem:[#allocation6 + $0x100] sm:$0xff]  ;;  %v1081_v18 = vpack.c.bf16 %v540_v11, %v539_v10  ;;  %v550_v10 = vld [vmem:[#allocation6 + $0x58] sm:$0xff]  ;;  %v581_v11 = vld [vmem:[#allocation6 + $0x150] sm:$0xff] }
  0xb3   : > { %v1113_v19 = vpack.c.bf16 %v572_v13, %v571_v12  ;;  %v582_v12 = vld [vmem:[#allocation6 + $0x158] sm:$0xff] }
  0xb4   : > { %v1133_v14 = vpack.c.bf16 %v582_v12, %v581_v11 }
  0xb8   : > { %998 = vmatpush1.bf16.xpose.msra.mxu0 %v997_v21  ;;  %v541_v21 = vld [vmem:[#allocation6 + $0x10] sm:$0xff] }
  0xb9   : > { %1062 = vmatpush1.bf16.xpose.msra.mxu1 %v1061_v22  ;;  %1000 = vmatprep.subr.bf16.mxu0 %v999_v23  ;;  %v542_v22 = vld [vmem:[#allocation6 + $0x18] sm:$0xff]  ;;  %v573_v23 = vld [vmem:[#allocation6 + $0x110] sm:$0xff] }
  0xba   : > { %1064 = vmatprep.subr.bf16.mxu1 %v1063_v24  ;;  %v1115_v24 = vpack.c.bf16 %v590_v17, %v589_v16  ;;  %v1085_v30 = vpack.c.bf16 %v542_v22, %v541_v21  ;;  %v1117_v31 = vpack.c.bf16 %v574_v25, %v573_v23  ;;  %v568_v16 = vld [vmem:[#allocation6 + $0xe8] sm:$0xff]  ;;  %v599_v17 = vld [vmem:[#allocation6 + $0x1e0] sm:$0xff] }
  0xbb   : > { %v552_v21 = vld [vmem:[#allocation6 + $0x68] sm:$0xff] }
  0xbc   : > { %v584_v25 = vld [vmem:[#allocation6 + $0x168] sm:$0xff] }
  0xc0   : > { %1002 = vmatpush1.bf16.xpose.msra.mxu0 %v1001_v33  ;;  %v1119_v33 = vpack.c.bf16 %v592_v29, %v591_v28  ;;  %v570_v28 = vld [vmem:[#allocation6 + $0xf8] sm:$0xff]  ;;  %v601_v29 = vld [vmem:[#allocation6 + $0x1f0] sm:$0xff] }
  0xc1   : > { %1066 = vmatpush1.bf16.xpose.msra.mxu1 %v1065_v34  ;;  %1004 = vmatprep.subr.bf16.mxu0 %v1003_v35  ;;  %v543_v34 = vld [vmem:[#allocation6 + $0x20] sm:$0xff]  ;;  %v544_v35 = vld [vmem:[#allocation6 + $0x28] sm:$0xff] }
  0xc2   : > { %1068 = vmatprep.subr.bf16.mxu1 %v1067_v36  ;;  %v575_v36 = vld [vmem:[#allocation6 + $0x120] sm:$0xff]  ;;  %v1089_v37 = vpack.c.bf16 %v544_v35, %v543_v34  ;;  %v554_v34 = vld [vmem:[#allocation6 + $0x78] sm:$0xff]  ;;  %v585_v35 = vld [vmem:[#allocation6 + $0x170] sm:$0xff] }
  0xc3   : > { %v1121_v40 = vpack.c.bf16 %v576_v38, %v575_v36 }
  0xc8   : > { %1006 = vmatpush1.bf16.xpose.msra.mxu0 %v1005_v45  ;;  %v594_v45 = vld [vmem:[#allocation6 + $0x1b8] sm:$0xff] }
  0xc9   : > { %1070 = vmatpush1.bf16.xpose.msra.mxu1 %v1069_v46  ;;  %1008 = vmatprep.subr.bf16.mxu0 %v1007_v47  ;;  %v545_v46 = vld [vmem:[#allocation6 + $0x30] sm:$0xff]  ;;  %v546_v47 = vld [vmem:[#allocation6 + $0x38] sm:$0xff]  ;;  %v1123_v49 = vpack.c.bf16 %v594_v45, %v593_v42  ;;  %v510_v42 = vshrl.u32 %v224_v39, 7 }
  0xca   : > { %1072 = vmatprep.subr.bf16.mxu1 %v1071_v48  ;;  %v1376_v48 = vmov 0.0   ;;  %v1093_v50 = vpack.c.bf16 %v546_v47, %v545_v46 }
  0xcb   : > { %228 = vst.msk [vmem:[#allocation2] sm:$0xf] %vm1698_vm0, %v1376_v48  ;;  %v615_v39 = vsub.s32 2, %v510_v42 }
  0xd0   : > { %1010 = vmatpush1.bf16.xpose.msra.mxu0 %v1009_v57  ;;  %v1095_v57 = vpack.c.bf16 %v564_v55, %v563_v54 }
  0xd1   : > { %1074 = vmatpush1.bf16.xpose.msra.mxu1 %v1073_v58  ;;  %1012 = vmatprep.subr.bf16.mxu0 %v1011_v59  ;;  %v596_v58 = vld [vmem:[#allocation6 + $0x1c8] sm:$0xff]  ;;  %v547_v59 = vld [vmem:[#allocation6 + $0x40] sm:$0xff] }
  0xd2   : > { %1076 = vmatprep.subr.bf16.mxu1 %v1075_v60  ;;  %v548_v60 = vld [vmem:[#allocation6 + $0x48] sm:$0xff]  ;;  %v1127_v61 = vpack.c.bf16 %v596_v58, %v595_v56  ;;  %v357_v54 = vld [vmem:[#allocation2] sm:$0xf]  ;;  %v619_v58 = vsub.s32 3, %v510_v42 }
  0xd3   : > { %v1097_v62 = vpack.c.bf16 %v548_v60, %v547_v59  ;;  %v607_v59 = vsub.s32 0, %v510_v42 }
  0xd8   : > { %1014 = vmatpush1.bf16.xpose.msra.mxu0 %v1013_v6  ;;  %v1099_v6 = vpack.c.bf16 %v566_v4, %v565_v3 }
  0xd9   : > { %1078 = vmatpush1.bf16.xpose.msra.mxu1 %v1077_v7  ;;  %1080 = vmatprep.subr.bf16.mxu0 %v1079_v8  ;;  %v598_v7 = vld [vmem:[#allocation6 + $0x1d8] sm:$0xff]  ;;  %v549_v8 = vld [vmem:[#allocation6 + $0x50] sm:$0xff] }
  0xda   : > { %1112 = vmatprep.subr.bf16.mxu1 %v1111_v9  ;;  %v1131_v9 = vpack.c.bf16 %v598_v7, %v597_v5  ;;  %v1101_v13 = vpack.c.bf16 %v550_v10, %v549_v8 }
  0xdf   : > { %423 = vmatmul.mubr.f32.vlgmr.msra.gmra.mrb[0].mxu0 %v1375_v0 }
  0xe0   : > { %494 = vmatmul.mubr.f32.vlgmr.msra.gmra.mrb[0].mxu1 %v1375_v0  ;;  %1082 = vmatpush3.bf16.msra.mxu0 %v1081_v18  ;;  %v561_v0 = vld [vmem:[#allocation6 + $0xb0] sm:$0xff]  ;;  %v1103_v18 = vpack.c.bf16 %v568_v16, %v567_v15 }
  0xe1   : > { %1114 = vmatpush3.bf16.msra.mxu1 %v1113_v19  ;;  %1084 = vmatprep.subr.bf16.mxu0 %v1083_v20  ;;  %v1091_v44 = vpack.c.bf16 %v562_v41, %v561_v0  ;;  %v600_v19 = vld [vmem:[#allocation6 + $0x1e8] sm:$0xff]  ;;  %v551_v20 = vld [vmem:[#allocation6 + $0x60] sm:$0xff] }
  0xe2   : > { %1116 = vmatprep.subr.bf16.mxu1 %v1115_v24  ;;  %v1135_v22 = vpack.c.bf16 %v600_v19, %v599_v17  ;;  %v1105_v23 = vpack.c.bf16 %v552_v21, %v551_v20  ;;  %v583_v24 = vld [vmem:[#allocation6 + $0x160] sm:$0xff] }
  0xe3   : > { %v1137_v27 = vpack.c.bf16 %v584_v25, %v583_v24 }
  0xe4   : > { %1086 = vmatpush3.bf16.msra.mxu0 %v1085_v30  ;;  %v602_v30 = vld [vmem:[#allocation6 + $0x1f8] sm:$0xff] }
  0xe5   : > { %1118 = vmatpush3.bf16.msra.mxu1 %v1117_v31  ;;  %1088 = vmatprep.subr.bf16.mxu0 %v1087_v32  ;;  %v1107_v31 = vpack.c.bf16 %v570_v28, %v569_v26  ;;  %v1139_v32 = vpack.c.bf16 %v602_v30, %v601_v29 }
  0xe6   : > { %1120 = vmatprep.subr.bf16.mxu1 %v1119_v33  ;;  %v553_v33 = vld [vmem:[#allocation6 + $0x70] sm:$0xff] }
  0xe7   : > { %v1109_v36 = vpack.c.bf16 %v554_v34, %v553_v33 }
  0xe8   : > { %1090 = vmatpush3.bf16.msra.mxu0 %v1089_v37  ;;  %v586_v37 = vld [vmem:[#allocation6 + $0x178] sm:$0xff] }
  0xe9   : > { %1122 = vmatpush3.bf16.msra.mxu1 %v1121_v40  ;;  %1092 = vmatprep.subr.bf16.mxu0 %v1091_v44  ;;  %v1141_v38 = vpack.c.bf16 %v586_v37, %v585_v35  ;;  %v1377_v40 = vmov 1966171168  }
  0xea   : > { %1124 = vmatprep.subr.bf16.mxu1 %v1123_v49  ;;  %v507_v0 = vunpack.c.l.s4 %v1377_v40 }
  0xec   : > { %1094 = vmatpush3.bf16.msra.mxu0 %v1093_v50  ;;  %v508_v41 = vunpack.c.0.s8 %v507_v0 }
  0xed   : > { %1126 = vmatpush3.bf16.msra.mxu1 %v1125_v53  ;;  %1096 = vmatprep.subr.bf16.mxu0 %v1095_v57  ;;  %v611_v57 = vsub.s32 1, %v510_v42 }
  0xee   : > { %1128 = vmatprep.subr.bf16.mxu1 %v1127_v61  ;;  %v511_v45 = vsub.s32 %v508_v41, %v510_v42 }
  0xf0   : > { %1098 = vmatpush3.bf16.msra.mxu0 %v1097_v62 }
  0xf1   : > { %1130 = vmatpush3.bf16.msra.mxu1 %v1129_v2  ;;  %1100 = vmatprep.subr.bf16.mxu0 %v1099_v6 }
  0xf2   : > { %1132 = vmatprep.subr.bf16.mxu1 %v1131_v9 }
  0xf4   : > { %1102 = vmatpush3.bf16.msra.mxu0 %v1101_v13 }
  0xf5   : > { %1134 = vmatpush3.bf16.msra.mxu1 %v1133_v14  ;;  %1104 = vmatprep.subr.bf16.mxu0 %v1103_v18 }
  0xf6   : > { %1136 = vmatprep.subr.bf16.mxu1 %v1135_v22 }
  0xf8   : > { %1106 = vmatpush3.bf16.msra.mxu0 %v1105_v23 }
  0xf9   : > { %1138 = vmatpush3.bf16.msra.mxu1 %v1137_v27  ;;  %1108 = vmatprep.subr.bf16.mxu0 %v1107_v31 }
  0xfa   : > { %1140 = vmatprep.subr.bf16.mxu1 %v1139_v32 }
  0xfc   : > { %1110 = vmatpush3.bf16.msra.mxu0 %v1109_v36 }
  0xfd   : > { %1142 = vmatpush3.bf16.msra.mxu1 %v1141_v38 }
 0x1b2   : > { %v424_v44 = vpop.f32.mrb[0].mxu0 }
 0x1b3   : > { %v495_v46 = vpop.f32.mrb[0].mxu1  ;;  %v426_v47 = vpop.f32.mrb[1].mxu0 }
 0x1b4   : > { %v504_v48 = vcombine.low %v424_v44, %v426_v47  ;;  %v497_v49 = vpop.f32.mrb[1].mxu1 }
 0x1b5   : > { %v505_v50 = vcombine.low %v495_v46, %v497_v49 }
 0x1b6   : > { %v512_v51 = vrot.slane %v504_v48, %v511_v45 }
 0x1b7   : > { %v519_v52 = vrot.slane %v505_v50, %v511_v45 }
 0x1b9   : > { %v520_v53 = vcombine.low %v512_v51, %v519_v52 }
 0x1bb   : > { %v527_v55 = vrot.slane %v520_v53, %v511_v45 }
 0x1bd   : > { %v529_v56 = vadd.f32 %v527_v55, %v357_v54 }
 0x1bf   : > { %534 = vst.msk [vmem:[#allocation2] sm:$0xf] %vm1698_vm0, %v529_v56 }
 0x1c6   : > { %v538_v60 = vld [vmem:[#allocation2] sm:$0xf] }
 0x1c7   : > { %v612_v61 = vrot.slane %v538_v60, %v611_v57  ;;  %v620_v62 = vrot.slane %v538_v60, %v619_v58  ;;  %v608_v63 = vrot.slane %v538_v60, %v607_v59  ;;  %v616_v1 = vrot.slane %v538_v60, %v615_v39 }
 0x1c9   : > { %689 = vmatprep.mubr.f32.mxu0 %v612_v61  ;;  %759 = vmatprep.mubr.f32.mxu1 %v620_v62 }
 0x1ca   : > { %690 = vmatmul.mubr.f32.vlgmr.msra.gmra.mrb[2].mxu0 %v608_v63  ;;  %760 = vmatmul.mubr.f32.vlgmr.msra.gmra.mrb[2].mxu1 %v616_v1 }
 0x29d   : > { %v913_v2 = vpop.f32.mrb[2].mxu0  ;;  %v948_v3 = vpop.f32.mrb[2].mxu1 }
 0x29e   : > { %v914_v4 = vpop.f32.mrb[3].mxu0  ;;  %v949_v5 = vpop.f32.mrb[3].mxu1 }
 0x29f   : > { %v915_v6 = vadd.f32 %v914_v4, %v913_v2  ;;  %v950_v7 = vadd.f32 %v949_v5, %v948_v3 }
 0x2a1   : > { %v692_v8 = vadd.f32 %v915_v6, %v603_v43 }
 0x2a3   : > { %v762_v9 = vadd.f32 %v950_v7, %v692_v8 }
 0x2a5   : > { %765 = vst [vmem:[%s218_s9] sm:$0x1] %v762_v9 }
 0x2a6   : > { %1294 = shalt.err (!%p1291_p5)
}
 0x2a7   : > { %s1295_s25 = scalar_lea.hbm %s1715_s26, 16  ;;  %s1299_s4 = scalar_lea.hbm %s1767_s3, 32 }
 0x2a8   : > { %p1296_p9 = scmp.ne.s32.totalorder %s1715_s26, %s1295_s25  ;;  %p1300_p3 = scmp.lt.u32.totalorder %s1715_s26, %s1767_s3 }
 0x2a9   : > { %p1301_p7 = scmp.lt.u32.totalorder %s1299_s4, %s1295_s25  ;;  %p1303_p4 = scmp.lt.u32.totalorder %s1295_s25, %s1715_s26 }
 0x2aa   : > { %p1297_p1 = pnand %p1296_p9, %p1495_p10 }
 0x2ab   : > { %p1302_p13 = por %p1301_p7, %p1300_p3 }
 0x2ac   : > { %p1298_p2 = pneg %p1297_p1 }
 0x2ad   : > { %p1304_p6 = por %p1303_p4, %p1302_p13 }
 0x2af   : > { %p1305_p8 = pnand %p1304_p6, %p1298_p2 }
 0x2b1   : > { %1308 = shalt.err (!%p1305_p8)
}
 0x2b2   : > { %1149 = dma.vmem_to_hbm [thread:$0]  (%p1495_p10), %s1717_s10, 16, %s1715_s26, %s767_s7  }
 0x2b3 PF: > { %s791_s22 = sand.u32 1, %s1347_s12   ;;  %p1787_p12 = scmp.ne.s32.totalorder %s1775_s23, 0 }
 0x2b4   : > { %p1788_p11 = scmp.ge.s32.totalorder %s1367_s17, 2  ;;  %s792_s24 = scalar_lea.sflag [#allocation5], %s791_s22 }
 0x2b6   : > { %p1160_p0 = pnand %p1788_p11, %p1787_p12 }
 0x2b8   : > { %1342 = dma.done.wait (!%p1160_p0), %s792_s24, 16  }
 0x2b9   : > { %1344 = vsyncadd (!%p1160_p0), %s792_s24, 4294967280  ;;  %s20_s17 = sadd.s32 1, %s1367_s17   ;;  %s1789_s12 = smov %s1351_s13 }
 0x2ba   : > { %p17_p5 = scmp.ge.s32.totalorder %s20_s17, 4   ;;  %s1790_s13 = smov %s1355_s14 }
 0x2bb   : > { %s1791_s14 = smov %s1504_s5  ;;  %s1792_s15 = smov %s1363_s16 }
 0x2bc   : > { %s1793_s16 = smov %s1795_s28  ;;  %19 = sbr.rel (!%p17_p5) target bundleno = 7 (0x7), region = 89 }
 0x2c3   :  { %796 = vsyncpa [#allocation4], 1 }
 0x2c4   :  { %798 = vsyncpa [#allocation4 + $0x1], 1 }
 0x2c5   :  { %799 = vsyncpa [#allocation7], 1 }
 0x2c6   :  { %800 = vsyncpa [#allocation5], 1 }
 0x2c7   :  { %802 = vsyncpa [#allocation5 + $0x1], 1 }

</bundles_post_ra>
